<compile_context>
chip_gen: v5e
topology: v5e:2x2
jax: 0.10.0
libtpu: 0.0.40
codegen_flags: <defaults>
</compile_context>

<pallas_src>
import functools

import jax
import jax.numpy as jnp
from jax.experimental import pallas as pl
from jax.experimental.pallas import tpu as pltpu

GCN_LAYERS = 2
GCN_DIM = 1024
GCN_RESIDUAL = 2
NODE_DIM = 256


# ----------------------------- padding helpers -----------------------------

def _round_up(n, m):
    return ((n + m - 1) // m) * m


def _pad_rows_to(x, rows):
    p = rows - x.shape[0]
    if p:
        x = jnp.pad(x, ((0, p),) + ((0, 0),) * (x.ndim - 1))
    return x


def _pad2_to(x, rows, cols):
    p0 = rows - x.shape[0]
    p1 = cols - x.shape[1]
    if p0 or p1:
        x = jnp.pad(x, ((0, p0), (0, p1)))
    return x


def _pick_row_tile(rows):
    """Row-tile size: multiple of 16 (bf16 sublane packing).

    >=512 padded rows -> 256-row tiles (fills v6e/v7x 256-wide MXU, grid >= 2
    so the 'parallel' axis can shard across v7x's two TensorCores);
    128..511 -> 128 (grid >= 2); below that a single tile.
    """
    rp = _round_up(max(rows, 1), 16)
    if rp <= 128:
        return rp
    if rp >= 512:
        return 256
    return 128


# ----------------------------- TPU-generation knobs ------------------------

_VMEM_LIMIT_CACHE = None


def _vmem_limit_bytes():
    """3/4 of physical VMEM (≈48 MiB v7x, ≈96 MiB v5e/v6e), capped at 100 MiB."""
    global _VMEM_LIMIT_CACHE
    if _VMEM_LIMIT_CACHE is None:
        cap = None
        try:
            info = pltpu.get_tpu_info()
            cap = getattr(info, "vmem_capacity_bytes", None)
        except Exception:
            cap = None
        if not cap:
            cap = 64 * 1024 * 1024  # conservative fallback: v7x per-TensorCore VMEM
        _VMEM_LIMIT_CACHE = int(min(int(cap) * 3 // 4, 100 * 1024 * 1024))
    return _VMEM_LIMIT_CACHE


_BUFFERED_SINGLE = None


def _single_buffer_supported():
    """Probe once whether pl.Buffered(1) (single-buffered resident blocks) lowers
    on this jax/libtpu combo; Pallas double-buffers every input by default even
    for constant index_maps, so this halves VMEM for resident weights / h."""
    global _BUFFERED_SINGLE
    if _BUFFERED_SINGLE is not None:
        return _BUFFERED_SINGLE
    try:
        spec = pl.BlockSpec((8, 128), lambda i: (0, 0), pipeline_mode=pl.Buffered(1))

        def _probe_kernel(x_ref, o_ref):
            o_ref[...] = x_ref[...] + 1.0

        out = pl.pallas_call(
            _probe_kernel,
            out_shape=jax.ShapeDtypeStruct((16, 128), jnp.float32),
            grid=(2,),
            in_specs=[spec],
            out_specs=pl.BlockSpec((8, 128), lambda i: (i, 0)),
        )(jnp.zeros((8, 128), jnp.float32))
        jax.block_until_ready(out)
        _BUFFERED_SINGLE = True
    except Exception:
        _BUFFERED_SINGLE = False
    return _BUFFERED_SINGLE


def _resident_spec(shape, index_map):
    """BlockSpec for a block whose index_map is constant across the grid."""
    if _single_buffer_supported():
        return pl.BlockSpec(shape, index_map, pipeline_mode=pl.Buffered(1))
    return pl.BlockSpec(shape, index_map)


# ----------------------------- Pallas kernels ------------------------------

def _linear_kernel(x_ref, w_ref, b_ref, o_ref, *, relu):
    # bf16 x bf16 -> f32 accumulate on the MXU.
    acc = jnp.dot(x_ref[...], w_ref[...], preferred_element_type=jnp.float32)
    acc = acc + b_ref[...]
    if relu:
        acc = jnp.maximum(acc, 0.0)
    o_ref[...] = acc.astype(o_ref.dtype)


def linear_pallas(x, w, b, *, relu=False, out_dtype=jnp.float32):
    """y = [relu](x @ w + b); x:(M, Din), w:(Din, Dout), b:(Dout,)."""
    M, Din = x.shape
    Dout = w.shape[1]
    tile_m = _pick_row_tile(M)
    Mp = _round_up(M, tile_m)
    xp = _pad_rows_to(x, Mp).astype(jnp.bfloat16)
    wb = w.astype(jnp.bfloat16)
    b2 = b.reshape(1, Dout).astype(jnp.float32)
    out = pl.pallas_call(
        functools.partial(_linear_kernel, relu=relu),
        out_shape=jax.ShapeDtypeStruct((Mp, Dout), out_dtype),
        grid_spec=pltpu.PrefetchScalarGridSpec(
            num_scalar_prefetch=0,
            grid=(Mp // tile_m,),
            in_specs=[
                pl.BlockSpec((tile_m, Din), lambda i: (i, 0)),
                _resident_spec((Din, Dout), lambda i: (0, 0)),   # weight resident
                _resident_spec((1, Dout), lambda i: (0, 0)),     # bias resident
            ],
            out_specs=pl.BlockSpec((tile_m, Dout), lambda i: (i, 0)),
        ),
        compiler_params=pltpu.CompilerParams(
            dimension_semantics=("parallel",),
            vmem_limit_bytes=_vmem_limit_bytes(),
        ),
    )(xp, wb, b2)
    return out[:M]


def _gcn_agg_kernel(a_ref, h_ref, tgt_ref, o_ref):
    # A rows are already scaled by 0.5/(deg+1e-7) in the wrapper, and h holds
    # [h_s ; h_o] stacked along rows -> a single MXU contraction + add.
    o_ref[...] = tgt_ref[...] + jnp.dot(
        a_ref[...], h_ref[...], preferred_element_type=jnp.float32)


def _normalized_map(mask, rows_p, cols_p):
    """Pre-normalized adjacency half: 0.5/(deg+1e-7) folded into the bf16 rows.

    The reciprocal is exact f32 (no approx); the only extra rounding vs. the
    reference is the final bf16 cast of the scaled one-hot values.
    Padded rows/cols are all-False -> exactly zero.
    """
    deg = jnp.sum(mask, axis=1).astype(jnp.float32)          # (T,)
    scale = 0.5 / (deg + 1e-7)                                # exact f32 reciprocal
    a = jnp.where(mask, scale[:, None], 0.0).astype(jnp.bfloat16)
    return _pad2_to(a, rows_p, cols_p)


def gcn_message_pallas(mask_s, mask_o, src, tgt, ws, bs, wo, bo):
    """Fused collect(subject) + collect(object) + additive update.

    mask_s, mask_o: (T, S) boolean one-hot maps; src: (S, Din); tgt: (T, Dout).
    Returns tgt + 0.5 * (norm(A_s) @ relu(src Ws + bs) + norm(A_o) @ relu(src Wo + bo)),
    where norm(A) divides each target row by (sum_k A[t,k] + 1e-7).
    """
    T, S = mask_s.shape
    Dout = tgt.shape[1]

    # Lane-dense: the source/edge axis is both the A lane axis and the MXU
    # contraction axis -> pad to a multiple of 128.
    Sp = _round_up(max(S, 1), 128)
    tile_t = _pick_row_tile(T)
    Tp = _round_up(T, tile_t)

    # Fused collect units: one (Din, 2*Dout) relu-linear instead of two -> one
    # pallas_call, src read once.  Padded src rows give relu(b) != 0, but their
    # A columns are zero so they never contribute.
    srcp = _pad_rows_to(src, Sp)
    w_so = jnp.concatenate([ws, wo], axis=1)                  # (Din, 2*Dout)
    b_so = jnp.concatenate([bs, bo], axis=0)                  # (2*Dout,)
    h = linear_pallas(srcp, w_so, b_so, relu=True, out_dtype=jnp.bfloat16)  # (Sp, 2*Dout)
    # Stack h_s over h_o along rows so the aggregation is a single contraction.
    h2 = jnp.concatenate([h[:, :Dout], h[:, Dout:]], axis=0)  # (2*Sp, Dout) bf16

    # Pre-normalized adjacency, concatenated along the contraction axis.
    a = jnp.concatenate(
        [_normalized_map(mask_s, Tp, Sp), _normalized_map(mask_o, Tp, Sp)],
        axis=1)                                               # (Tp, 2*Sp) bf16
    tgtp = _pad_rows_to(tgt, Tp).astype(jnp.float32)

    # TODO(synk): for Sp beyond ~2048 add an 'arbitrary' S-contraction grid axis
    # with an f32 VMEM accumulator instead of keeping h2 fully resident, and for
    # genuinely large graphs replace this dense one-hot A @ h path with a
    # scalar-prefetched gather / segment-sum kernel (O(E*D) instead of O(T*S*D)).
    # TODO(synk): on v7x the exactly-representable A values could be stored fp8
    # to halve A traffic, once the fp8 x bf16 MXU combination is verified.
    out = pl.pallas_call(
        _gcn_agg_kernel,
        out_shape=jax.ShapeDtypeStruct((Tp, Dout), jnp.float32),
        grid_spec=pltpu.PrefetchScalarGridSpec(
            num_scalar_prefetch=0,
            grid=(Tp // tile_t,),
            in_specs=[
                pl.BlockSpec((tile_t, 2 * Sp), lambda i: (i, 0)),
                _resident_spec((2 * Sp, Dout), lambda i: (0, 0)),  # h resident across T tiles
                pl.BlockSpec((tile_t, Dout), lambda i: (i, 0)),
            ],
            out_specs=pl.BlockSpec((tile_t, Dout), lambda i: (i, 0)),
        ),
        compiler_params=pltpu.CompilerParams(
            dimension_semantics=("parallel",),
            vmem_limit_bytes=_vmem_limit_bytes(),
        ),
    )(a, h2, tgtp)
    return out[:T]


# ----------------------------- model in JAX --------------------------------

def make_map(ind_subject, ind_object, N, K):
    # Equivalent of torch scatter_ with attend_score == 1: boolean one-hot maps,
    # built directly in both orientations (avoids a dense f32 materialization
    # and an HBM transpose before the second message of each layer).
    del K
    nodes = jnp.arange(N, dtype=jnp.int32)
    m_s = ind_subject[None, :] == nodes[:, None]    # (N, K)
    m_o = ind_object[None, :] == nodes[:, None]     # (N, K)
    m_s_t = ind_subject[:, None] == nodes[None, :]  # (K, N)
    m_o_t = ind_object[:, None] == nodes[None, :]   # (K, N)
    return m_s, m_o, m_s_t, m_o_t


def gcn_layer(lp, x_obj, x_pred, maps):
    # TODO(synk): _GraphConvolutionLayer source was not shipped with this module; we reproduce
    # the standard graph-rcnn semantics (ReLU-linear collect units, attention-sum-normalized
    # message aggregation, additive update units) that this backbone is built on.
    m_s, m_o, m_s_t, m_o_t = maps
    x_obj_new = gcn_message_pallas(
        m_s, m_o, x_pred, x_obj,
        lp["w_rel2obj_s"], lp["b_rel2obj_s"],
        lp["w_rel2obj_o"], lp["b_rel2obj_o"])
    x_pred_new = gcn_message_pallas(
        m_s_t, m_o_t, x_obj_new, x_pred,
        lp["w_obj2rel_s"], lp["b_obj2rel_s"],
        lp["w_obj2rel_o"], lp["b_obj2rel_o"])
    return x_obj_new, x_pred_new


def gcn_forward(params, region_feat, region_box,
                sg_node_feat, sg_edge_feat, sg_object_ind, sg_node_box):
    N = sg_node_feat.shape[0]
    K = sg_edge_feat.shape[0]
    R = region_feat.shape[0]

    # node_change: Linear(256 -> 1024)
    x_obj1 = linear_pallas(sg_node_feat, params["node_change_w"], params["node_change_b"])
    x_pred1 = sg_edge_feat

    # graph-convolution stack (mirrors the torch loop, including the fact that every
    # layer consumes x_obj1 / x_pred1, which only advance at residual boundaries)
    ind = sg_object_ind.astype(jnp.int32)
    maps = make_map(ind[0], ind[1], N, K)
    for i in range(GCN_LAYERS):
        lp = params["gcn"][i]
        x_obj, x_pred = gcn_layer(lp, x_obj1, x_pred1, maps)
        if (i + 1) % GCN_RESIDUAL == 0:
            x_obj = x_obj + x_obj1
            x_obj1 = x_obj
            x_pred = x_pred + x_pred1
            x_pred1 = x_pred

    # wq: Linear(256 -> 1024) on the region features
    region_q = linear_pallas(region_feat, params["wq_w"], params["wq_b"])

    # pad_subg_feat[i, 0] = wq(region_feat)[i], pad_subg_feat[i, 1:] = x_obj1
    n = N + 1
    node_block = jnp.broadcast_to(x_obj1[None, :, :], (R, N, GCN_DIM))
    pad_subg_feat = jnp.concatenate([region_q[:, None, :], node_block], axis=1)
    box_block = jnp.broadcast_to(sg_node_box[None, :, :], (R, N, 4))
    pad_subg_box = jnp.concatenate([region_box[:, None, :], box_block], axis=1)
    subg_node_num = [n] * R
    return pad_subg_feat, pad_subg_box, subg_node_num


# ----------------------------- pure-JAX reference ---------------------------

def _ref_message(mask_s, mask_o, src, tgt, ws, bs, wo, bo):
    hi = jax.lax.Precision.HIGHEST
    a_s = mask_s.astype(jnp.float32)
    a_o = mask_o.astype(jnp.float32)
    h_s = jnp.maximum(jnp.dot(src, ws, precision=hi) + bs, 0.0)
    h_o = jnp.maximum(jnp.dot(src, wo, precision=hi) + bo, 0.0)
    c_s = jnp.dot(a_s, h_s, precision=hi) / (a_s.sum(1, keepdims=True) + 1e-7)
    c_o = jnp.dot(a_o, h_o, precision=hi) / (a_o.sum(1, keepdims=True) + 1e-7)
    return tgt + 0.5 * (c_s + c_o)


def _ref_forward(params, region_feat, region_box,
                 sg_node_feat, sg_edge_feat, sg_object_ind, sg_node_box):
    hi = jax.lax.Precision.HIGHEST
    N = sg_node_feat.shape[0]
    K = sg_edge_feat.shape[0]
    R = region_feat.shape[0]
    x_obj1 = jnp.dot(sg_node_feat, params["node_change_w"], precision=hi) + params["node_change_b"]
    x_pred1 = sg_edge_feat
    ind = sg_object_ind.astype(jnp.int32)
    m_s, m_o, m_s_t, m_o_t = make_map(ind[0], ind[1], N, K)
    for i in range(GCN_LAYERS):
        lp = params["gcn"][i]
        x_obj = _ref_message(m_s, m_o, x_pred1, x_obj1,
                             lp["w_rel2obj_s"], lp["b_rel2obj_s"],
                             lp["w_rel2obj_o"], lp["b_rel2obj_o"])
        x_pred = _ref_message(m_s_t, m_o_t, x_obj, x_pred1,
                              lp["w_obj2rel_s"], lp["b_obj2rel_s"],
                              lp["w_obj2rel_o"], lp["b_obj2rel_o"])
        if (i + 1) % GCN_RESIDUAL == 0:
            x_obj = x_obj + x_obj1
            x_obj1 = x_obj
            x_pred = x_pred + x_pred1
            x_pred1 = x_pred
    region_q = jnp.dot(region_feat, params["wq_w"], precision=hi) + params["wq_b"]
    node_block = jnp.broadcast_to(x_obj1[None], (R, N, GCN_DIM))
    feat = jnp.concatenate([region_q[:, None, :], node_block], axis=1)
    box_block = jnp.broadcast_to(sg_node_box[None], (R, N, 4))
    box = jnp.concatenate([region_box[:, None, :], box_block], axis=1)
    return feat, box


# ----------------------------- parameters -----------------------------------

def init_params(key):
    ks = jax.random.split(key, 4)
    params = {}
    # node_change: normal_init(0, 0.001), bias zero
    params["node_change_w"] = 0.001 * jax.random.normal(ks[0], (NODE_DIM, GCN_DIM), jnp.float32)
    params["node_change_b"] = jnp.zeros((GCN_DIM,), jnp.float32)
    # wq: kaiming_uniform, bias zero
    bound = (6.0 / NODE_DIM) ** 0.5
    params["wq_w"] = jax.random.uniform(ks[1], (NODE_DIM, GCN_DIM), jnp.float32, -bound, bound)
    params["wq_b"] = jnp.zeros((GCN_DIM,), jnp.float32)
    # collect-unit linears: normal_init(0, 0.01), bias zero
    gcn_params = []
    for i in range(GCN_LAYERS):
        lp = {}
        for j, name in enumerate(["rel2obj_s", "rel2obj_o", "obj2rel_s", "obj2rel_o"]):
            k = jax.random.fold_in(ks[2], i * 4 + j)
            lp["w_" + name] = 0.01 * jax.random.normal(k, (GCN_DIM, GCN_DIM), jnp.float32)
            lp["b_" + name] = jnp.zeros((GCN_DIM,), jnp.float32)
        gcn_params.append(lp)
    params["gcn"] = gcn_params
    # edge_change / wk / wv / dropout / attention() are defined in __init__ but never
    # used in forward(), so they are intentionally not instantiated here.
    return params


# ----------------------------- demo -----------------------------------------

if __name__ == "__main__":
    key = jax.random.PRNGKey(0)
    k1, k2, k3, k4, k5, k6 = jax.random.split(key, 6)

    R, N, K = 2, 6, 10  # regions, sg nodes, sg edges
    region_feat = jax.random.normal(k1, (R, NODE_DIM), jnp.float32)
    region_box = jax.random.uniform(k2, (R, 4), jnp.float32)
    sg_node_feat = jax.random.normal(k3, (N, NODE_DIM), jnp.float32)
    sg_edge_feat = jax.random.normal(k4, (K, GCN_DIM), jnp.float32)
    sg_node_box = jax.random.uniform(k5, (N, 4), jnp.float32)
    sg_object_ind = jax.random.randint(k6, (2, K), 0, N, jnp.int32)

    params = init_params(jax.random.PRNGKey(42))

    pad_subg_feat, pad_subg_box, subg_node_num = gcn_forward(
        params, region_feat, region_box,
        sg_node_feat, sg_edge_feat, sg_object_ind, sg_node_box)
    jax.block_until_ready((pad_subg_feat, pad_subg_box))

    assert pad_subg_feat.shape == (R, N + 1, GCN_DIM)
    assert pad_subg_box.shape == (R, N + 1, 4)
    assert subg_node_num == [N + 1] * R
    assert bool(jnp.all(jnp.isfinite(pad_subg_feat)))

    # f32 reference check (bf16 MXU operands + f32 accumulation -> loose tolerance).
    ref_feat, ref_box = _ref_forward(
        params, region_feat, region_box,
        sg_node_feat, sg_edge_feat, sg_object_ind, sg_node_box)
    assert bool(jnp.allclose(pad_subg_box, ref_box))
    assert bool(jnp.allclose(pad_subg_feat, ref_feat, rtol=5e-2, atol=5e-2))

    print("KERNEL_OK")
</pallas_src>

<mosaic_0001>
module attributes {stable_mosaic.version = 11 : i64} {
  func.func @_probe_kernel(%arg0: i32, %arg1: memref<8x128xf32, #tpu.memory_space<vmem>>, %arg2: memref<8x128xf32, #tpu.memory_space<vmem>>) attributes {dimension_semantics = [#tpu.dimension_semantics<arbitrary>], iteration_bounds = array<i64: 2>, scalar_prefetch = 0 : i64, scratch_operands = 0 : i64, tpu.core_type = #tpu.core_type<tc>, window_params = [{pipeline_mode = #tpu.pipeline_mode<synchronous>, transform_indices = @transform_0, window_bounds = array<i64: 8, 128>}, {transform_indices = @transform_1, window_bounds = array<i64: 8, 128>}]} {
    %c0 = arith.constant 0 : index
    %c0_0 = arith.constant 0 : index
    %0 = vector.load %arg1[%c0, %c0_0] : memref<8x128xf32, #tpu.memory_space<vmem>>, vector<8x128xf32>
    %cst = arith.constant 1.000000e+00 : f32
    %1 = vector.broadcast %cst : f32 to vector<8x128xf32>
    %2 = arith.addf %0, %1 : vector<8x128xf32>
    %c0_1 = arith.constant 0 : index
    %c0_2 = arith.constant 0 : index
    %3 = vector.load %arg2[%c0_1, %c0_2] : memref<8x128xf32, #tpu.memory_space<vmem>>, vector<8x128xf32>
    tpu.vector_store %arg2[%c0_1, %c0_2], %2 {strides = array<i32>} : memref<8x128xf32, #tpu.memory_space<vmem>>, vector<8x128xf32>,
    return
  }
  func.func @transform_0(%arg0: i32) -> (i32, i32) {
    %c0_i32 = arith.constant 0 : i32
    %c0_i32_0 = arith.constant 0 : i32
    %c0_i32_1 = arith.constant 0 : i32
    return %c0_i32, %c0_i32_0 : i32, i32
  }
  func.func @transform_1(%arg0: i32) -> (i32, i32) {
    %c0_i32 = arith.constant 0 : i32
    %c0_i32_0 = arith.constant 0 : i32
    return %arg0, %c0_i32 : i32, i32
  }
}

module attributes {stable_mosaic.version = 11 : i64} {
  func.func @_linear_kernel(%arg0: i32, %arg1: memref<16x256xbf16, #tpu.memory_space<vmem>>, %arg2: memref<256x1024xbf16, #tpu.memory_space<vmem>>, %arg3: memref<1x1024xf32, #tpu.memory_space<vmem>>, %arg4: memref<16x1024xf32, #tpu.memory_space<vmem>>) attributes {dimension_semantics = [#tpu.dimension_semantics<parallel>], iteration_bounds = array<i64: 1>, scalar_prefetch = 0 : i64, scratch_operands = 0 : i64, tpu.core_type = #tpu.core_type<tc>, window_params = [{transform_indices = @transform_0, window_bounds = array<i64: 16, 256>}, {pipeline_mode = #tpu.pipeline_mode<synchronous>, transform_indices = @transform_1, window_bounds = array<i64: 256, 1024>}, {pipeline_mode = #tpu.pipeline_mode<synchronous>, transform_indices = @transform_2, window_bounds = array<i64: 1, 1024>}, {transform_indices = @transform_3, window_bounds = array<i64: 16, 1024>}]} {
    %c0 = arith.constant 0 : index
    %c0_0 = arith.constant 0 : index
    %0 = vector.load %arg1[%c0, %c0_0] : memref<16x256xbf16, #tpu.memory_space<vmem>>, vector<16x256xbf16>
    %c0_1 = arith.constant 0 : index
    %c0_2 = arith.constant 0 : index
    %1 = vector.load %arg2[%c0_1, %c0_2] : memref<256x1024xbf16, #tpu.memory_space<vmem>>, vector<256x1024xbf16>
    %cst = arith.constant dense<0.000000e+00> : vector<16x1024xf32>
    %2 = tpu.matmul %0, %1, %cst {dimension_numbers = #tpu.dot_dimension_numbers<[1], [0], [0], [1], [0, 0, 1, 1], [], []>} : vector<16x256xbf16>, vector<256x1024xbf16>, vector<16x1024xf32> -> vector<16x1024xf32>
    %c0_3 = arith.constant 0 : index
    %c0_4 = arith.constant 0 : index
    %3 = vector.load %arg3[%c0_3, %c0_4] : memref<1x1024xf32, #tpu.memory_space<vmem>>, vector<1x1024xf32>
    %4 = vector.broadcast %3 : vector<1x1024xf32> to vector<16x1024xf32>
    %5 = arith.addf %2, %4 : vector<16x1024xf32>
    %c0_5 = arith.constant 0 : index
    %c0_6 = arith.constant 0 : index
    %6 = vector.load %arg4[%c0_5, %c0_6] : memref<16x1024xf32, #tpu.memory_space<vmem>>, vector<16x1024xf32>
    tpu.vector_store %arg4[%c0_5, %c0_6], %5 {strides = array<i32>} : memref<16x1024xf32, #tpu.memory_space<vmem>>, vector<16x1024xf32>,
    return
  }
  func.func @transform_0(%arg0: i32) -> (i32, i32) {
    %c0_i32 = arith.constant 0 : i32
    %c0_i32_0 = arith.constant 0 : i32
    return %arg0, %c0_i32 : i32, i32
  }
  func.func @transform_1(%arg0: i32) -> (i32, i32) {
    %c0_i32 = arith.constant 0 : i32
    %c0_i32_0 = arith.constant 0 : i32
    %c0_i32_1 = arith.constant 0 : i32
    return %c0_i32, %c0_i32_0 : i32, i32
  }
  func.func @transform_2(%arg0: i32) -> (i32, i32) {
    %c0_i32 = arith.constant 0 : i32
    %c0_i32_0 = arith.constant 0 : i32
    %c0_i32_1 = arith.constant 0 : i32
    return %c0_i32, %c0_i32_0 : i32, i32
  }
  func.func @transform_3(%arg0: i32) -> (i32, i32) {
    %c0_i32 = arith.constant 0 : i32
    %c0_i32_0 = arith.constant 0 : i32
    return %arg0, %c0_i32 : i32, i32
  }
}

</mosaic_0001>

<bundles_post_ra>
// kernel: tpu_custom_call.1
= control target key start
LH: loop header
LB: loop body
LE: loop exit
PB: predicated region body
PF: predicated region fallthrough
CT: control target
= control target key end

     0   :  { %6 = vsyncpa [#allocation3], 0  ;;  %s441_s0 = inlined_call_operand.hbm [shape: f32[8,128], index: 0, kind: input, shape index: {}]   ;;  %s442_s1 = inlined_call_operand.hbm [shape: f32[16,128], index: 1, kind: output, shape index: {}]  }
   0x1   :  { %7 = vsyncpa [#allocation4], 0 }
   0x2   :  { %9 = vsyncpa [#allocation4 + $0x1], 0  ;;  %s357_s6 = smov 0   ;;  %s359_s7 = smov 0  }
   0x3   :  { %s361_s8 = smov 0   ;;  %s363_s9 = smov 0  }
   0x4 LB: > { %s378_s10 = sadd.s32 4294967295, %s344_s9   ;;  %s188_s11 = sadd.s32 4294967294, %s344_s9   ;;  %s344_s9 = sphi %s363_s9, %s448_s9   ;;  %s340_s8 = sphi %s361_s8, %s447_s8   ;;  %s336_s7 = sphi %s359_s7, %s446_s7   ;;  %s332_s6 = sphi %s357_s6, %s445_s6  }
   0x5   : > { %s382_s12 = sadd.s32 1, %s344_s9   ;;  %s43_s13 = sadd.s32 1, %s340_s8 }
   0x6   : > { %s40_s14 = ssub.s32 %s344_s9, %s382_s12  ;;  %p53_p0 = scmp.ne.s32.totalorder %s340_s8, %s336_s7 }
   0x7   : > { %p41_p1 = scmp.eq.s32.totalorder %s40_s14, 0  ;;  %p54_p2 = scmp.eq.s32.totalorder %s378_s10, 1 }
   0x8   : > { %p59_p3 = scmp.ne.s32.totalorder %s336_s7, %s332_s6  ;;  %p60_p4 = scmp.eq.s32.totalorder %s188_s11, 1 }
   0x9   : > { %s393_s15 = scalar_select %p41_p1, %s340_s8, %s43_s13  }
   0xa   : > { %p395_p5 = por %p54_p2, %p53_p0  ;;  %p399_p6 = por %p60_p4, %p59_p3 }
   0xb   : > { %p189_p7 = scmp.ge.s32.totalorder %s344_s9, 1  ;;  %p67_p8 = scmp.lt.s32.totalorder %s344_s9, 3 }
   0xc   : > { %p212_p9 = scmp.eq.s32.totalorder %s378_s10, 0  ;;  %s79_s20 = sshll.u32 %s441_s0, 4  ;;  %s80_s20 = int_to_ptr.hbm [resolvable:$true] %s79_s20 }
   0xd   : > { %p68_p10 = pnand %p189_p7, %p67_p8  ;;  %s346_s21 = smov [#allocation2]  }
   0xe   : > { %s81_s22 = sshll.u32 %s346_s21, 4  ;;  %s82_s22 = int_to_ptr.vmem [resolvable:$true] %s81_s22 }
   0xf   : > { %p204_p11 = pneg %p68_p10  ;;  %94 = sbr.rel (%p68_p10) target bundleno = 37 (0x25), region = 24 }
  0x11   : > { %p205_p12 = pnand %p212_p9, %p204_p11 }
  0x13   : > { %207 = dma.hbm_to_vmem [thread:$0]  (!%p205_p12), %s80_s20, 128, %s82_s22, [#allocation3]  }
  0x14   : > { %323 = dma.done.wait (%p212_p9), [#allocation3], 128  }
  0x15   : > { %325 = vsyncadd (%p212_p9), [#allocation3], 4294967168  ;;  %s107_s23 = sand.u32 1, %s336_s7   ;;  %s195_s24 = sshll.u32 %s378_s10, 3  ;;  %v110_v0 = vld [vmem:[#allocation2] sm:$0xff] }
  0x16   : > { %s193_s25 = sshll.u32 %s107_s23, 3  ;;  %s124_s28 = scalar_lea.hbm %s442_s1, %s195_s24  ;;  %v111_v1 = vadd.f32 1.0, %v110_v0 }
  0x17   : > { %s109_s29 = scalar_lea.vmem [#allocation5], %s193_s25  ;;  %s128_s2 = sshll.u32 %s124_s28, 4  ;;  %s129_s2 = int_to_ptr.hbm [resolvable:$true] %s128_s2 }
  0x18   : > { %s126_s30 = sshll.u32 %s109_s29, 4  ;;  %112 = vst [vmem:[%s109_s29] sm:$0xff] %v111_v1  ;;  %s114_s3 = scalar_lea.sflag [#allocation4], %s107_s23  ;;  %s127_s30 = int_to_ptr.vmem [resolvable:$true] %s126_s30 }
  0x19   : > { %s292_s4 = sshra.s32 %s129_s2, 4  ;;  %s298_s13 = scalar_lea.hbm %s442_s1, 16  ;;  %s293_s4 = int_to_ptr.hbm [resolvable:$true] %s292_s4 }
  0x1a   : > { %s294_s5 = scalar_lea.hbm %s293_s4, 8  ;;  %p299_p2 = scmp.lt.s32.totalorder %s293_s4, %s442_s1 }
  0x1b   : > { %p295_p13 = scmp.ne.s32.totalorder %s293_s4, %s294_s5  ;;  %p300_p3 = scmp.lt.s32.totalorder %s298_s13, %s294_s5 }
  0x1d   : > { %p296_p0 = pnand %p295_p13, %p395_p5  ;;  %p301_p4 = por %p300_p3, %p299_p2 }
  0x1f   : > { %p297_p1 = pneg %p296_p0 }
  0x21   : > { %p302_p7 = pnand %p301_p4, %p297_p1 }
  0x23   : > { %305 = shalt.err (!%p302_p7)
}
  0x24   : > { %202 = dma.vmem_to_hbm [thread:$0]  (%p395_p5), %s127_s30, 128, %s129_s2, %s114_s3  }
  0x25 PF: > { %p214_p8 = scmp.ge.s32.totalorder %s344_s9, 2  ;;  %s140_s19 = sand.u32 1, %s332_s6  }
  0x26   : > { %s141_s20 = scalar_lea.sflag [#allocation4], %s140_s19 }
  0x27   : > { %p209_p9 = pnand %p214_p8, %p399_p6 }
  0x29   : > { %p210_p10 = pneg %p209_p9 }
  0x2b   : > { %327 = dma.done.wait (%p210_p10), %s141_s20, 128  }
  0x2c   : > { %329 = vsyncadd (%p210_p10), %s141_s20, 4294967168  ;;  %p12_p11 = scmp.ge.s32.totalorder %s382_s12, 4   ;;  %s445_s6 = smov %s336_s7 }
  0x2d   : > { %s446_s7 = smov %s340_s8  ;;  %s447_s8 = smov %s393_s15 }
  0x2e   : > { %s448_s9 = smov %s382_s12  ;;  %14 = sbr.rel (!%p12_p11) target bundleno = 4 (0x4), region = 61 }
  0x33   :  { %147 = vsyncpa [#allocation3], 1 }
  0x34   :  { %149 = vsyncpa [#allocation3 + $0x1], 1 }
  0x35   :  { %150 = vsyncpa [#allocation4], 1 }
  0x36   :  { %152 = vsyncpa [#allocation4 + $0x1], 1 }

// kernel: tpu_custom_call.1
= control target key start
LH: loop header
LB: loop body
LE: loop exit
PB: predicated region body
PF: predicated region fallthrough
CT: control target
= control target key end

     0   :  { %8 = vsyncpa [#allocation3], 0  ;;  %s1952_s0 = inlined_call_operand.hbm [shape: bf16[16,256], index: 0, kind: input, shape index: {}]   ;;  %s1953_s1 = inlined_call_operand.hbm [shape: bf16[256,1024], index: 1, kind: input, shape index: {}]   ;;  %s1954_s2 = inlined_call_operand.hbm [shape: f32[1,1024], index: 2, kind: input, shape index: {}]   ;;  %s1955_s3 = inlined_call_operand.hbm [shape: f32[16,1024], index: 3, kind: output, shape index: {}]  }
   0x1   :  { %9 = vsyncpa [#allocation6], 0  ;;  %s28_s14 = sshll.u32 %s1953_s1, 4  ;;  %s29_s14 = int_to_ptr.hbm [resolvable:$true] %s28_s14 }
   0x2   :  { %10 = vsyncpa [#allocation4], 0  ;;  %s1880_s15 = smov [#allocation5]   ;;  %s15_s19 = sshll.u32 %s1952_s0, 4  ;;  %s16_s19 = int_to_ptr.hbm [resolvable:$true] %s15_s19 }
   0x3   :  { %s30_s16 = sshll.u32 %s1880_s15, 4  ;;  %s1881_s20 = smov 512   ;;  %s31_s16 = int_to_ptr.vmem [resolvable:$true] %s30_s16 }
   0x4   :  { %s1882_s21 = smov 32   ;;  %s1883_s22 = smov [#allocation2]  }
   0x5   :  { %36 = dma.hbm_to_vmem [thread:$0]  %s29_s14, 16384, %s31_s16, [#allocation6], %s1881_s20, %s1881_s20, %s1882_s21  }
   0x6   :  { %s17_s23 = sshll.u32 %s1883_s22, 4  ;;  %s1884_s24 = smov 128   ;;  %s18_s23 = int_to_ptr.vmem [resolvable:$true] %s17_s23 }
   0x7   :  { %s1885_s25 = smov 8   ;;  %s42_s27 = sshll.u32 %s1954_s2, 4  ;;  %s43_s27 = int_to_ptr.hbm [resolvable:$true] %s42_s27 }
   0x8   :  { %23 = dma.hbm_to_vmem [thread:$0]  %s16_s19, 256, %s18_s23, [#allocation3], %s1884_s24, %s1884_s24, %s1885_s25  }
   0x9   :  { %s1886_s28 = smov [#allocation7]  }
   0xa   :  { %s44_s29 = sshll.u32 %s1886_s28, 4  ;;  %s45_s29 = int_to_ptr.vmem [resolvable:$true] %s44_s29 }
   0xb   :  { %47 = dma.hbm_to_vmem [thread:$0]  %s43_s27, 128, %s45_s29, [#allocation6]  }
   0xc   :  { %1874 = dma.done.wait [#allocation3], 256  }
   0xd   :  { %1875 = vsyncadd [#allocation3], 4294967040 }
   0xe   :  { %1876 = dma.done.wait [#allocation6], 16512  }
   0xf   :  { %1877 = vsyncadd [#allocation6], 4294950784  ;;  %v1352_v0 = vld [vmem:[#allocation5 + $0x1c0] sm:$0xf]  ;;  %v1696_v5 = vld [vmem:[#allocation5 + $0x1c4] sm:$0xf] }
  0x10   :  { %v1700_v1 = vld [vmem:[#allocation5 + $0x1dc] sm:$0xf0]  ;;  %v1354_v6 = vld [vmem:[#allocation5 + $0x1e0] sm:$0xf0]  ;;  %s1887_s0 = smov [#allocation8]   ;;  %s1104_s5 = sshll.u32 %s1955_s3, 4  ;;  %s1105_s5 = int_to_ptr.hbm [resolvable:$true] %s1104_s5 }
  0x11   :  { %v1608_v2 = vld [vmem:[#allocation5 + $0x3c0] sm:$0xf]  ;;  %v1353_v3 = vor.u32 %v1700_v1, %v1352_v0  ;;  %v1357_v8 = vor.u32 %v1696_v5, %v1354_v6  ;;  %v1760_v9 = vld [vmem:[#allocation5 + $0x3c4] sm:$0xf]  ;;  %s1102_s2 = sshll.u32 %s1887_s0, 4  ;;  %s1888_s6 = smov 1024   ;;  %s1103_s2 = int_to_ptr.vmem [resolvable:$true] %s1102_s2 }
  0x12   :  { %v1764_v4 = vld [vmem:[#allocation5 + $0x3dc] sm:$0xf0]  ;;  %v1610_v10 = vld [vmem:[#allocation5 + $0x3e0] sm:$0xf0]  ;;  %s1889_s7 = smov 64  }
  0x13   :  { %v1609_v7 = vor.u32 %v1764_v4, %v1608_v2  ;;  %v1320_v11 = vld [vmem:[#allocation5 + $0x180] sm:$0xf]  ;;  %858 = vmatpush.bf16.msra.mxu0 %v1353_v3  ;;  %v1613_v12 = vor.u32 %v1760_v9, %v1610_v10  ;;  %886 = vmatpush.bf16.msra.mxu2 %v1357_v8  ;;  %v1688_v18 = vld [vmem:[#allocation5 + $0x184] sm:$0xf] }
  0x14   :  { %v1692_v13 = vld [vmem:[#allocation5 + $0x19c] sm:$0xf0]  ;;  %v1322_v19 = vld [vmem:[#allocation5 + $0x1a0] sm:$0xf0] }
  0x15   :  { %v1576_v14 = vld [vmem:[#allocation5 + $0x380] sm:$0xf]  ;;  %872 = vmatpush.bf16.msra.mxu1 %v1609_v7  ;;  %v1321_v16 = vor.u32 %v1692_v13, %v1320_v11  ;;  %v1752_v20 = vld [vmem:[#allocation5 + $0x384] sm:$0xf]  ;;  %900 = vmatpush.bf16.msra.mxu3 %v1613_v12  ;;  %v1325_v21 = vor.u32 %v1688_v18, %v1322_v19 }
  0x16   :  { %v1756_v15 = vld [vmem:[#allocation5 + $0x39c] sm:$0xf0]  ;;  %v1578_v22 = vld [vmem:[#allocation5 + $0x3a0] sm:$0xf0] }
  0x17   :  { %v1577_v17 = vor.u32 %v1756_v15, %v1576_v14  ;;  %v1288_v23 = vld [vmem:[#allocation5 + $0x140] sm:$0xf]  ;;  %v1581_v25 = vor.u32 %v1752_v20, %v1578_v22  ;;  %v1680_v28 = vld [vmem:[#allocation5 + $0x144] sm:$0xf]  ;;  %859 = vmatpush.bf16.msra.mxu0 %v1321_v16  ;;  %887 = vmatpush.bf16.msra.mxu2 %v1325_v21 }
  0x18   :  { %v1684_v24 = vld [vmem:[#allocation5 + $0x15c] sm:$0xf0]  ;;  %v1290_v30 = vld [vmem:[#allocation5 + $0x160] sm:$0xf0] }
  0x19   :  { %v1544_v26 = vld [vmem:[#allocation5 + $0x340] sm:$0xf]  ;;  %v1289_v29 = vor.u32 %v1684_v24, %v1288_v23  ;;  %v1744_v31 = vld [vmem:[#allocation5 + $0x344] sm:$0xf]  ;;  %873 = vmatpush.bf16.msra.mxu1 %v1577_v17  ;;  %v1293_v34 = vor.u32 %v1680_v28, %v1290_v30  ;;  %901 = vmatpush.bf16.msra.mxu3 %v1581_v25  ;;  %v1360_v28 = vld [vmem:[#allocation5 + $0x1c8] sm:$0xf] }
  0x1a   :  { %v1748_v27 = vld [vmem:[#allocation5 + $0x35c] sm:$0xf0]  ;;  %v1546_v32 = vld [vmem:[#allocation5 + $0x360] sm:$0xf0]  ;;  %v1616_v30 = vld [vmem:[#allocation5 + $0x3c8] sm:$0xf] }
  0x1b   :  { %v1545_v33 = vor.u32 %v1748_v27, %v1544_v26  ;;  %v1256_v35 = vld [vmem:[#allocation5 + $0x100] sm:$0xf]  ;;  %v1549_v38 = vor.u32 %v1744_v31, %v1546_v32  ;;  %v1672_v40 = vld [vmem:[#allocation5 + $0x104] sm:$0xf]  ;;  %860 = vmatpush.bf16.msra.mxu0 %v1289_v29  ;;  %888 = vmatpush.bf16.msra.mxu2 %v1293_v34  ;;  %v1701_v29 = vld [vmem:[#allocation5 + $0x1e4] sm:$0xf0] }
  0x1c   :  { %v1676_v36 = vld [vmem:[#allocation5 + $0x11c] sm:$0xf0]  ;;  %v1258_v41 = vld [vmem:[#allocation5 + $0x120] sm:$0xf0]  ;;  %v1765_v32 = vld [vmem:[#allocation5 + $0x3e4] sm:$0xf0] }
  0x1d   :  { %v1512_v37 = vld [vmem:[#allocation5 + $0x300] sm:$0xf]  ;;  %v1736_v42 = vld [vmem:[#allocation5 + $0x304] sm:$0xf]  ;;  %v1257_v44 = vor.u32 %v1676_v36, %v1256_v35  ;;  %874 = vmatpush.bf16.msra.mxu1 %v1545_v33  ;;  %v1261_v46 = vor.u32 %v1672_v40, %v1258_v41  ;;  %902 = vmatpush.bf16.msra.mxu3 %v1549_v38  ;;  %v1697_v33 = vld [vmem:[#allocation5 + $0x1cc] sm:$0xf]  ;;  %v1361_v40 = vor.u32 %v1701_v29, %v1360_v28 }
  0x1e   :  { %v1740_v39 = vld [vmem:[#allocation5 + $0x31c] sm:$0xf0]  ;;  %v1514_v43 = vld [vmem:[#allocation5 + $0x320] sm:$0xf0]  ;;  %v1362_v34 = vld [vmem:[#allocation5 + $0x1e8] sm:$0xf0]  ;;  %v1617_v41 = vor.u32 %v1765_v32, %v1616_v30 }
  0x1f   :  { %v1513_v45 = vor.u32 %v1740_v39, %v1512_v37  ;;  %v1224_v47 = vld [vmem:[#allocation5 + $0xc0] sm:$0xf]  ;;  %v1517_v50 = vor.u32 %v1736_v42, %v1514_v43  ;;  %v1664_v52 = vld [vmem:[#allocation5 + $0xc4] sm:$0xf]  ;;  %861 = vmatpush.bf16.msra.mxu0 %v1257_v44  ;;  %889 = vmatpush.bf16.msra.mxu2 %v1261_v46  ;;  %v1761_v37 = vld [vmem:[#allocation5 + $0x3cc] sm:$0xf]  ;;  %v1365_v42 = vor.u32 %v1697_v33, %v1362_v34 }
  0x20   :  { %v1668_v48 = vld [vmem:[#allocation5 + $0xdc] sm:$0xf0]  ;;  %v1226_v53 = vld [vmem:[#allocation5 + $0xe0] sm:$0xf0]  ;;  %v1618_v38 = vld [vmem:[#allocation5 + $0x3e8] sm:$0xf0] }
  0x21   :  { %v1480_v49 = vld [vmem:[#allocation5 + $0x2c0] sm:$0xf]  ;;  %v1728_v54 = vld [vmem:[#allocation5 + $0x2c4] sm:$0xf]  ;;  %v1225_v56 = vor.u32 %v1668_v48, %v1224_v47  ;;  %875 = vmatpush.bf16.msra.mxu1 %v1513_v45  ;;  %v1229_v58 = vor.u32 %v1664_v52, %v1226_v53  ;;  %903 = vmatpush.bf16.msra.mxu3 %v1517_v50  ;;  %v1328_v43 = vld [vmem:[#allocation5 + $0x188] sm:$0xf]  ;;  %v1621_v46 = vor.u32 %v1761_v37, %v1618_v38 }
  0x22   :  { %v1732_v51 = vld [vmem:[#allocation5 + $0x2dc] sm:$0xf0]  ;;  %v1482_v55 = vld [vmem:[#allocation5 + $0x2e0] sm:$0xf0]  ;;  %v1693_v44 = vld [vmem:[#allocation5 + $0x1a4] sm:$0xf0] }
  0x23   :  { %v1481_v57 = vor.u32 %v1732_v51, %v1480_v49  ;;  %v1192_v59 = vld [vmem:[#allocation5 + $0x80] sm:$0xf]  ;;  %v1485_v62 = vor.u32 %v1728_v54, %v1482_v55  ;;  %v1656_v0 = vld [vmem:[#allocation5 + $0x84] sm:$0xf]  ;;  %862 = vmatpush.bf16.msra.mxu0 %v1225_v56  ;;  %890 = vmatpush.bf16.msra.mxu2 %v1229_v58  ;;  %v1584_v45 = vld [vmem:[#allocation5 + $0x388] sm:$0xf]  ;;  %v1329_v52 = vor.u32 %v1693_v44, %v1328_v43 }
  0x24   :  { %v1660_v60 = vld [vmem:[#allocation5 + $0x9c] sm:$0xf0]  ;;  %v1194_v1 = vld [vmem:[#allocation5 + $0xa0] sm:$0xf0]  ;;  %v1757_v47 = vld [vmem:[#allocation5 + $0x3a4] sm:$0xf0] }
  0x25   :  { %v1448_v61 = vld [vmem:[#allocation5 + $0x280] sm:$0xf]  ;;  %v1720_v2 = vld [vmem:[#allocation5 + $0x284] sm:$0xf]  ;;  %v1193_v4 = vor.u32 %v1660_v60, %v1192_v59  ;;  %876 = vmatpush.bf16.msra.mxu1 %v1481_v57  ;;  %v1197_v6 = vor.u32 %v1656_v0, %v1194_v1  ;;  %904 = vmatpush.bf16.msra.mxu3 %v1485_v62  ;;  %v1689_v48 = vld [vmem:[#allocation5 + $0x18c] sm:$0xf]  ;;  %v1585_v53 = vor.u32 %v1757_v47, %v1584_v45 }
  0x26   :  { %v1724_v63 = vld [vmem:[#allocation5 + $0x29c] sm:$0xf0]  ;;  %v1450_v3 = vld [vmem:[#allocation5 + $0x2a0] sm:$0xf0]  ;;  %v1330_v49 = vld [vmem:[#allocation5 + $0x1a8] sm:$0xf0] }
  0x27   :  { %v1449_v5 = vor.u32 %v1724_v63, %v1448_v61  ;;  %v1160_v7 = vld [vmem:[#allocation5 + $0x40] sm:$0xf]  ;;  %v1453_v10 = vor.u32 %v1720_v2, %v1450_v3  ;;  %v1648_v12 = vld [vmem:[#allocation5 + $0x44] sm:$0xf]  ;;  %863 = vmatpush.bf16.msra.mxu0 %v1193_v4  ;;  %891 = vmatpush.bf16.msra.mxu2 %v1197_v6  ;;  %v1753_v50 = vld [vmem:[#allocation5 + $0x38c] sm:$0xf]  ;;  %v1333_v54 = vor.u32 %v1689_v48, %v1330_v49 }
  0x28   :  { %v1652_v8 = vld [vmem:[#allocation5 + $0x5c] sm:$0xf0]  ;;  %v1162_v13 = vld [vmem:[#allocation5 + $0x60] sm:$0xf0]  ;;  %v1586_v51 = vld [vmem:[#allocation5 + $0x3a8] sm:$0xf0] }
  0x29   :  { %v1416_v9 = vld [vmem:[#allocation5 + $0x240] sm:$0xf]  ;;  %v1712_v14 = vld [vmem:[#allocation5 + $0x244] sm:$0xf]  ;;  %v1161_v16 = vor.u32 %v1652_v8, %v1160_v7  ;;  %877 = vmatpush.bf16.msra.mxu1 %v1449_v5  ;;  %v1165_v20 = vor.u32 %v1648_v12, %v1162_v13  ;;  %905 = vmatpush.bf16.msra.mxu3 %v1453_v10  ;;  %v1296_v55 = vld [vmem:[#allocation5 + $0x148] sm:$0xf]  ;;  %v1589_v58 = vor.u32 %v1753_v50, %v1586_v51 }
  0x2a   :  { %v1716_v11 = vld [vmem:[#allocation5 + $0x25c] sm:$0xf0]  ;;  %v1418_v15 = vld [vmem:[#allocation5 + $0x260] sm:$0xf0]  ;;  %v1685_v56 = vld [vmem:[#allocation5 + $0x164] sm:$0xf0] }
  0x2b   :  { %v1128_v17 = vld [vmem:[#allocation5] sm:$0xf]  ;;  %v1417_v19 = vor.u32 %v1716_v11, %v1416_v9  ;;  %v1640_v23 = vld [vmem:[#allocation5 + $0x4] sm:$0xf]  ;;  %v1421_v24 = vor.u32 %v1712_v14, %v1418_v15  ;;  %864 = vmatpush.bf16.msra.mxu0 %v1161_v16  ;;  %892 = vmatpush.bf16.msra.mxu2 %v1165_v20  ;;  %v1552_v57 = vld [vmem:[#allocation5 + $0x348] sm:$0xf]  ;;  %v1297_v1 = vor.u32 %v1685_v56, %v1296_v55 }
  0x2c   :  { %v1644_v18 = vld [vmem:[#allocation5 + $0x1c] sm:$0xf0]  ;;  %v1130_v25 = vld [vmem:[#allocation5 + $0x20] sm:$0xf0]  ;;  %v1749_v59 = vld [vmem:[#allocation5 + $0x364] sm:$0xf0] }
  0x2d   :  { %v1384_v21 = vld [vmem:[#allocation5 + $0x200] sm:$0xf]  ;;  %v1704_v26 = vld [vmem:[#allocation5 + $0x204] sm:$0xf]  ;;  %v1129_v31 = vor.u32 %v1644_v18, %v1128_v17  ;;  %878 = vmatpush.bf16.msra.mxu1 %v1417_v19  ;;  %v1133_v36 = vor.u32 %v1640_v23, %v1130_v25  ;;  %906 = vmatpush.bf16.msra.mxu3 %v1421_v24  ;;  %v1681_v60 = vld [vmem:[#allocation5 + $0x14c] sm:$0xf]  ;;  %v1553_v5 = vor.u32 %v1749_v59, %v1552_v57 }
  0x2e   :  { %v1708_v22 = vld [vmem:[#allocation5 + $0x21c] sm:$0xf0]  ;;  %v1386_v27 = vld [vmem:[#allocation5 + $0x220] sm:$0xf0]  ;;  %v1298_v61 = vld [vmem:[#allocation5 + $0x168] sm:$0xf0] }
  0x2f   :  { %v1385_v35 = vor.u32 %v1708_v22, %v1384_v21  ;;  %v1389_v39 = vor.u32 %v1704_v26, %v1386_v27  ;;  %865 = vmatpush.bf16.msra.mxu0 %v1129_v31  ;;  %893 = vmatpush.bf16.msra.mxu2 %v1133_v36  ;;  %v1745_v62 = vld [vmem:[#allocation5 + $0x34c] sm:$0xf]  ;;  %v1264_v0 = vld [vmem:[#allocation5 + $0x108] sm:$0xf]  ;;  %v1120_v3 = vld [vmem:[#allocation2] sm:$0xf]  ;;  %v1301_v6 = vor.u32 %v1681_v60, %v1298_v61 }
  0x30   :  { %v1554_v63 = vld [vmem:[#allocation5 + $0x368] sm:$0xf0]  ;;  %v1677_v2 = vld [vmem:[#allocation5 + $0x124] sm:$0xf0]  ;;  %v1639_v4 = vld [vmem:[#allocation2 + $0x4] sm:$0xf0] }
  0x31   :  { %879 = vmatpush.bf16.msra.mxu1 %v1385_v35  ;;  %907 = vmatpush.bf16.msra.mxu3 %v1389_v39  ;;  %v1520_v7 = vld [vmem:[#allocation5 + $0x308] sm:$0xf]  ;;  %v1919_v8 = vor.u32 %v1639_v4, %v1120_v3  ;;  %v1638_v9 = vld [vmem:[#allocation2 + $0x4] sm:$0xf]  ;;  %v1122_v10 = vld [vmem:[#allocation2 + $0x8] sm:$0xf0]  ;;  %v1557_v11 = vor.u32 %v1745_v62, %v1554_v63  ;;  %v1265_v18 = vor.u32 %v1677_v2, %v1264_v0 }
  0x32   :  { %v1741_v12 = vld [vmem:[#allocation5 + $0x324] sm:$0xf0]  ;;  %v1673_v13 = vld [vmem:[#allocation5 + $0x10c] sm:$0xf]  ;;  %v1921_v15 = vor.u32 %v1638_v9, %v1122_v10  ;;  %v1368_v2 = vld [vmem:[#allocation5 + $0x1d0] sm:$0xf] }
  0x33   :  { %914 = vmatpush.bf16.msrb.mxu0 %v1361_v40  ;;  %942 = vmatpush.bf16.msrb.mxu2 %v1365_v42  ;;  %v1266_v14 = vld [vmem:[#allocation5 + $0x128] sm:$0xf0]  ;;  %v1521_v19 = vor.u32 %v1741_v12, %v1520_v7  ;;  %v1232_v21 = vld [vmem:[#allocation5 + $0xc8] sm:$0xf]  ;;  %v1702_v3 = vld [vmem:[#allocation5 + $0x1ec] sm:$0xf0] }
  0x34   :  { %v1737_v16 = vld [vmem:[#allocation5 + $0x30c] sm:$0xf]  ;;  %894 = vmatmul.bf16.vlgmr.msra.gmra.mxu2 %v1919_v8  ;;  %866 = vmatmul.bf16.vlgmr.msra.gmra.mxu0 %v1919_v8  ;;  %v1269_v20 = vor.u32 %v1673_v13, %v1266_v14  ;;  %v1669_v22 = vld [vmem:[#allocation5 + $0xe4] sm:$0xf0]  ;;  %v1624_v4 = vld [vmem:[#allocation5 + $0x3d0] sm:$0xf] }
  0x35   :  { %928 = vmatpush.bf16.msrb.mxu1 %v1617_v41  ;;  %956 = vmatpush.bf16.msrb.mxu3 %v1621_v46  ;;  %v1522_v17 = vld [vmem:[#allocation5 + $0x328] sm:$0xf0]  ;;  %v1488_v23 = vld [vmem:[#allocation5 + $0x2c8] sm:$0xf]  ;;  %v1233_v30 = vor.u32 %v1669_v22, %v1232_v21  ;;  %v1698_v7 = vld [vmem:[#allocation5 + $0x1d4] sm:$0xf] }
  0x36   :  { %908 = vmatmul.bf16.vlgmr.msra.gmra.mxu3 %v1921_v15  ;;  %v1525_v24 = vor.u32 %v1737_v16, %v1522_v17  ;;  %v1733_v25 = vld [vmem:[#allocation5 + $0x2e4] sm:$0xf0]  ;;  %v1665_v26 = vld [vmem:[#allocation5 + $0xcc] sm:$0xf]  ;;  %880 = vmatmul.bf16.vlgmr.msra.gmra.mxu1 %v1921_v15  ;;  %v1370_v9 = vld [vmem:[#allocation5 + $0x1f0] sm:$0xf0]  ;;  %v1369_v16 = vor.u32 %v1702_v3, %v1368_v2 }
  0x37   :  { %915 = vmatpush.bf16.msrb.mxu0 %v1329_v52  ;;  %943 = vmatpush.bf16.msrb.mxu2 %v1333_v54  ;;  %v1234_v27 = vld [vmem:[#allocation5 + $0xe8] sm:$0xf0]  ;;  %v1489_v31 = vor.u32 %v1733_v25, %v1488_v23  ;;  %v1200_v33 = vld [vmem:[#allocation5 + $0x88] sm:$0xf]  ;;  %v1762_v12 = vld [vmem:[#allocation5 + $0x3d4] sm:$0xf] }
  0x38   :  { %v1729_v28 = vld [vmem:[#allocation5 + $0x2cc] sm:$0xf]  ;;  %v1237_v32 = vor.u32 %v1665_v26, %v1234_v27  ;;  %v1661_v34 = vld [vmem:[#allocation5 + $0xa4] sm:$0xf0]  ;;  %v1626_v13 = vld [vmem:[#allocation5 + $0x3f0] sm:$0xf0] }
  0x39   :  { %929 = vmatpush.bf16.msrb.mxu1 %v1585_v53  ;;  %957 = vmatpush.bf16.msrb.mxu3 %v1589_v58  ;;  %v1490_v29 = vld [vmem:[#allocation5 + $0x2e8] sm:$0xf0]  ;;  %v1456_v35 = vld [vmem:[#allocation5 + $0x288] sm:$0xf]  ;;  %v1201_v42 = vor.u32 %v1661_v34, %v1200_v33  ;;  %v1592_v21 = vld [vmem:[#allocation5 + $0x390] sm:$0xf]  ;;  %v1629_v22 = vor.u32 %v1762_v12, %v1626_v13 }
  0x3a   :  { %v1493_v36 = vor.u32 %v1729_v28, %v1490_v29  ;;  %v1725_v37 = vld [vmem:[#allocation5 + $0x2a4] sm:$0xf0]  ;;  %v1657_v38 = vld [vmem:[#allocation5 + $0x8c] sm:$0xf]  ;;  %v1758_v23 = vld [vmem:[#allocation5 + $0x3ac] sm:$0xf0] }
  0x3b   :  { %916 = vmatpush.bf16.msrb.mxu0 %v1297_v1  ;;  %944 = vmatpush.bf16.msrb.mxu2 %v1301_v6  ;;  %v1202_v39 = vld [vmem:[#allocation5 + $0xa8] sm:$0xf0]  ;;  %v1457_v43 = vor.u32 %v1725_v37, %v1456_v35  ;;  %v1168_v45 = vld [vmem:[#allocation5 + $0x48] sm:$0xf]  ;;  %v1766_v6 = vld [vmem:[#allocation5 + $0x3ec] sm:$0xf0]  ;;  %v1593_v29 = vor.u32 %v1758_v23, %v1592_v21 }
  0x3c   :  { %v1721_v40 = vld [vmem:[#allocation5 + $0x28c] sm:$0xf]  ;;  %v1205_v44 = vor.u32 %v1657_v38, %v1202_v39  ;;  %v1653_v46 = vld [vmem:[#allocation5 + $0x64] sm:$0xf0]  ;;  %v1625_v17 = vor.u32 %v1766_v6, %v1624_v4  ;;  %v1338_v25 = vld [vmem:[#allocation5 + $0x1b0] sm:$0xf0] }
  0x3d   :  { %930 = vmatpush.bf16.msrb.mxu1 %v1553_v5  ;;  %958 = vmatpush.bf16.msrb.mxu3 %v1557_v11  ;;  %v1458_v41 = vld [vmem:[#allocation5 + $0x2a8] sm:$0xf0]  ;;  %v1424_v47 = vld [vmem:[#allocation5 + $0x248] sm:$0xf]  ;;  %v1169_v54 = vor.u32 %v1653_v46, %v1168_v45  ;;  %v1754_v26 = vld [vmem:[#allocation5 + $0x394] sm:$0xf] }
  0x3e   :  { %v1461_v48 = vor.u32 %v1721_v40, %v1458_v41  ;;  %v1717_v49 = vld [vmem:[#allocation5 + $0x264] sm:$0xf0]  ;;  %v1649_v50 = vld [vmem:[#allocation5 + $0x4c] sm:$0xf]  ;;  %v1594_v27 = vld [vmem:[#allocation5 + $0x3b0] sm:$0xf0] }
  0x3f   :  { %917 = vmatpush.bf16.msrb.mxu0 %v1265_v18  ;;  %945 = vmatpush.bf16.msrb.mxu2 %v1269_v20  ;;  %v1170_v51 = vld [vmem:[#allocation5 + $0x68] sm:$0xf0]  ;;  %v1136_v55 = vld [vmem:[#allocation5 + $0x8] sm:$0xf]  ;;  %v1425_v57 = vor.u32 %v1717_v49, %v1424_v47  ;;  %v1373_v18 = vor.u32 %v1698_v7, %v1370_v9  ;;  %v1694_v20 = vld [vmem:[#allocation5 + $0x1ac] sm:$0xf0]  ;;  %v1597_v34 = vor.u32 %v1754_v26, %v1594_v27 }
  0x40   :  { %v1713_v52 = vld [vmem:[#allocation5 + $0x24c] sm:$0xf]  ;;  %v1645_v56 = vld [vmem:[#allocation5 + $0x24] sm:$0xf0]  ;;  %v1173_v58 = vor.u32 %v1649_v50, %v1170_v51  ;;  %v1560_v33 = vld [vmem:[#allocation5 + $0x350] sm:$0xf] }
  0x41   :  { %931 = vmatpush.bf16.msrb.mxu1 %v1521_v19  ;;  %959 = vmatpush.bf16.msrb.mxu3 %v1525_v24  ;;  %v1426_v53 = vld [vmem:[#allocation5 + $0x268] sm:$0xf0]  ;;  %v1392_v59 = vld [vmem:[#allocation5 + $0x208] sm:$0xf]  ;;  %v1137_v5 = vor.u32 %v1645_v56, %v1136_v55  ;;  %v1336_v19 = vld [vmem:[#allocation5 + $0x190] sm:$0xf] }
  0x42   :  { %v1709_v60 = vld [vmem:[#allocation5 + $0x224] sm:$0xf0]  ;;  %v1641_v61 = vld [vmem:[#allocation5 + $0xc] sm:$0xf]  ;;  %v1429_v62 = vor.u32 %v1713_v52, %v1426_v53  ;;  %v1690_v24 = vld [vmem:[#allocation5 + $0x194] sm:$0xf]  ;;  %v1337_v28 = vor.u32 %v1694_v20, %v1336_v19 }
  0x43   :  { %918 = vmatpush.bf16.msrb.mxu0 %v1233_v30  ;;  %946 = vmatpush.bf16.msrb.mxu2 %v1237_v32  ;;  %v1138_v63 = vld [vmem:[#allocation5 + $0x28] sm:$0xf0]  ;;  %v1393_v10 = vor.u32 %v1709_v60, %v1392_v59  ;;  %v1341_v30 = vor.u32 %v1690_v24, %v1338_v25  ;;  %v1686_v32 = vld [vmem:[#allocation5 + $0x16c] sm:$0xf0]  ;;  %v1306_v37 = vld [vmem:[#allocation5 + $0x170] sm:$0xf0] }
  0x44   :  { %v1705_v0 = vld [vmem:[#allocation5 + $0x20c] sm:$0xf]  ;;  %v1141_v11 = vor.u32 %v1641_v61, %v1138_v63  ;;  %v1750_v35 = vld [vmem:[#allocation5 + $0x36c] sm:$0xf0]  ;;  %v1746_v38 = vld [vmem:[#allocation5 + $0x354] sm:$0xf] }
  0x45   :  { %932 = vmatpush.bf16.msrb.mxu1 %v1489_v31  ;;  %960 = vmatpush.bf16.msrb.mxu3 %v1493_v36  ;;  %v1394_v1 = vld [vmem:[#allocation5 + $0x228] sm:$0xf0]  ;;  %v1304_v31 = vld [vmem:[#allocation5 + $0x150] sm:$0xf]  ;;  %v1682_v36 = vld [vmem:[#allocation5 + $0x154] sm:$0xf]  ;;  %v1561_v41 = vor.u32 %v1750_v35, %v1560_v33 }
  0x46   :  { %v1397_v14 = vor.u32 %v1705_v0, %v1394_v1  ;;  %v1562_v39 = vld [vmem:[#allocation5 + $0x370] sm:$0xf0]  ;;  %v1305_v40 = vor.u32 %v1686_v32, %v1304_v31  ;;  %v1528_v45 = vld [vmem:[#allocation5 + $0x310] sm:$0xf] }
  0x47   :  { %919 = vmatpush.bf16.msrb.mxu0 %v1201_v42  ;;  %947 = vmatpush.bf16.msrb.mxu2 %v1205_v44  ;;  %v1309_v42 = vor.u32 %v1682_v36, %v1306_v37  ;;  %v1678_v44 = vld [vmem:[#allocation5 + $0x12c] sm:$0xf0]  ;;  %v1565_v46 = vor.u32 %v1746_v38, %v1562_v39  ;;  %v1274_v49 = vld [vmem:[#allocation5 + $0x130] sm:$0xf0]  ;;  %v1376_v38 = vld [vmem:[#allocation5 + $0x1d8] sm:$0xf] }
  0x48   :  { %v1742_v47 = vld [vmem:[#allocation5 + $0x32c] sm:$0xf0]  ;;  %v1738_v50 = vld [vmem:[#allocation5 + $0x314] sm:$0xf]  ;;  %v1703_v39 = vld [vmem:[#allocation5 + $0x1f4] sm:$0xf0] }
  0x49   :  { %933 = vmatpush.bf16.msrb.mxu1 %v1457_v43  ;;  %961 = vmatpush.bf16.msrb.mxu3 %v1461_v48  ;;  %v1272_v43 = vld [vmem:[#allocation5 + $0x110] sm:$0xf]  ;;  %v1674_v48 = vld [vmem:[#allocation5 + $0x114] sm:$0xf]  ;;  %v1529_v53 = vor.u32 %v1742_v47, %v1528_v45  ;;  %v1763_v47 = vld [vmem:[#allocation5 + $0x3dc] sm:$0xf] }
  0x4a   :  { %v1530_v51 = vld [vmem:[#allocation5 + $0x330] sm:$0xf0]  ;;  %v1273_v52 = vor.u32 %v1678_v44, %v1272_v43  ;;  %v1240_v55 = vld [vmem:[#allocation5 + $0xd0] sm:$0xf]  ;;  %v1699_v43 = vld [vmem:[#allocation5 + $0x1dc] sm:$0xf] }
  0x4b   :  { %920 = vmatpush.bf16.msrb.mxu0 %v1169_v54  ;;  %948 = vmatpush.bf16.msrb.mxu2 %v1173_v58  ;;  %v1277_v54 = vor.u32 %v1674_v48, %v1274_v49  ;;  %v1670_v56 = vld [vmem:[#allocation5 + $0xec] sm:$0xf0]  ;;  %v1533_v58 = vor.u32 %v1738_v50, %v1530_v51  ;;  %v1666_v60 = vld [vmem:[#allocation5 + $0xd4] sm:$0xf]  ;;  %v1378_v44 = vld [vmem:[#allocation5 + $0x1f8] sm:$0xf0]  ;;  %v1377_v50 = vor.u32 %v1703_v39, %v1376_v38 }
  0x4c   :  { %v1734_v59 = vld [vmem:[#allocation5 + $0x2ec] sm:$0xf0]  ;;  %v1242_v61 = vld [vmem:[#allocation5 + $0xf0] sm:$0xf0]  ;;  %v1241_v0 = vor.u32 %v1670_v56, %v1240_v55  ;;  %v1634_v48 = vld [vmem:[#allocation5 + $0x3f8] sm:$0xf0] }
  0x4d   :  { %934 = vmatpush.bf16.msrb.mxu1 %v1425_v57  ;;  %962 = vmatpush.bf16.msrb.mxu3 %v1429_v62  ;;  %v1496_v57 = vld [vmem:[#allocation5 + $0x2d0] sm:$0xf]  ;;  %v1730_v62 = vld [vmem:[#allocation5 + $0x2d4] sm:$0xf]  ;;  %v1245_v2 = vor.u32 %v1666_v60, %v1242_v61  ;;  %v1600_v55 = vld [vmem:[#allocation5 + $0x398] sm:$0xf]  ;;  %v1637_v56 = vor.u32 %v1763_v47, %v1634_v48 }
  0x4e   :  { %v1498_v63 = vld [vmem:[#allocation5 + $0x2f0] sm:$0xf0]  ;;  %v1497_v1 = vor.u32 %v1734_v59, %v1496_v57  ;;  %v1208_v3 = vld [vmem:[#allocation5 + $0x90] sm:$0xf]  ;;  %v1759_v57 = vld [vmem:[#allocation5 + $0x3b4] sm:$0xf0] }
  0x4f   :  { %921 = vmatpush.bf16.msrb.mxu0 %v1137_v5  ;;  %949 = vmatpush.bf16.msrb.mxu2 %v1141_v11  ;;  %v1662_v4 = vld [vmem:[#allocation5 + $0xac] sm:$0xf0]  ;;  %v1501_v6 = vor.u32 %v1730_v62, %v1498_v63  ;;  %v1658_v9 = vld [vmem:[#allocation5 + $0x94] sm:$0xf]  ;;  %v1346_v59 = vld [vmem:[#allocation5 + $0x1b8] sm:$0xf0]  ;;  %v1601_v63 = vor.u32 %v1759_v57, %v1600_v55 }
  0x50   :  { %v1464_v5 = vld [vmem:[#allocation5 + $0x290] sm:$0xf]  ;;  %v1722_v11 = vld [vmem:[#allocation5 + $0x294] sm:$0xf]  ;;  %v1209_v13 = vor.u32 %v1662_v4, %v1208_v3  ;;  %v1755_v60 = vld [vmem:[#allocation5 + $0x39c] sm:$0xf] }
  0x51   :  { %935 = vmatpush.bf16.msrb.mxu1 %v1393_v10  ;;  %963 = vmatpush.bf16.msrb.mxu3 %v1397_v14  ;;  %v1726_v7 = vld [vmem:[#allocation5 + $0x2ac] sm:$0xf0]  ;;  %v1210_v10 = vld [vmem:[#allocation5 + $0xb0] sm:$0xf0]  ;;  %v1602_v61 = vld [vmem:[#allocation5 + $0x3b8] sm:$0xf0] }
  0x52   :  { %950 = vmatmul.bf16.vlgmr.msrb.gmra.mxu2 %v1919_v8  ;;  %922 = vmatmul.bf16.vlgmr.msrb.gmra.mxu0 %v1919_v8  ;;  %v1466_v12 = vld [vmem:[#allocation5 + $0x2b0] sm:$0xf0]  ;;  %v1465_v14 = vor.u32 %v1726_v7, %v1464_v5  ;;  %v1432_v19 = vld [vmem:[#allocation5 + $0x250] sm:$0xf]  ;;  %v1568_v3 = vld [vmem:[#allocation5 + $0x358] sm:$0xf]  ;;  %v1605_v4 = vor.u32 %v1755_v60, %v1602_v61 }
  0x53   :  { %970 = vmatpush.bf16.msra.mxu0 %v1369_v16  ;;  %998 = vmatpush.bf16.msra.mxu2 %v1373_v18  ;;  %v1213_v16 = vor.u32 %v1658_v9, %v1210_v10  ;;  %v1654_v18 = vld [vmem:[#allocation5 + $0x6c] sm:$0xf0]  ;;  %v1469_v20 = vor.u32 %v1722_v11, %v1466_v12  ;;  %v1178_v23 = vld [vmem:[#allocation5 + $0x70] sm:$0xf0]  ;;  %v1751_v5 = vld [vmem:[#allocation5 + $0x374] sm:$0xf0] }
  0x54   :  { %964 = vmatmul.bf16.vlgmr.msrb.gmra.mxu3 %v1921_v15  ;;  %936 = vmatmul.bf16.vlgmr.msrb.gmra.mxu1 %v1921_v15  ;;  %v1718_v21 = vld [vmem:[#allocation5 + $0x26c] sm:$0xf0]  ;;  %v1714_v24 = vld [vmem:[#allocation5 + $0x254] sm:$0xf]  ;;  %v1314_v7 = vld [vmem:[#allocation5 + $0x178] sm:$0xf0]  ;;  %v1569_v12 = vor.u32 %v1751_v5, %v1568_v3 }
  0x55   :  { %984 = vmatpush.bf16.msra.mxu1 %v1625_v17  ;;  %1012 = vmatpush.bf16.msra.mxu3 %v1629_v22  ;;  %v1176_v17 = vld [vmem:[#allocation5 + $0x50] sm:$0xf]  ;;  %v1650_v22 = vld [vmem:[#allocation5 + $0x54] sm:$0xf]  ;;  %v1747_v9 = vld [vmem:[#allocation5 + $0x35c] sm:$0xf] }
  0x56   :  { %v1434_v25 = vld [vmem:[#allocation5 + $0x270] sm:$0xf0]  ;;  %v1177_v26 = vor.u32 %v1654_v18, %v1176_v17  ;;  %v1144_v27 = vld [vmem:[#allocation5 + $0x10] sm:$0xf]  ;;  %v1570_v10 = vld [vmem:[#allocation5 + $0x378] sm:$0xf0] }
  0x57   :  { %971 = vmatpush.bf16.msra.mxu0 %v1337_v28  ;;  %999 = vmatpush.bf16.msra.mxu2 %v1341_v30  ;;  %v1646_v28 = vld [vmem:[#allocation5 + $0x2c] sm:$0xf0]  ;;  %v1181_v30 = vor.u32 %v1650_v22, %v1178_v23  ;;  %v1642_v33 = vld [vmem:[#allocation5 + $0x14] sm:$0xf]  ;;  %v1536_v17 = vld [vmem:[#allocation5 + $0x318] sm:$0xf]  ;;  %v1573_v18 = vor.u32 %v1747_v9, %v1570_v10 }
  0x58   :  { %v1400_v31 = vld [vmem:[#allocation5 + $0x210] sm:$0xf]  ;;  %v1146_v35 = vld [vmem:[#allocation5 + $0x30] sm:$0xf0]  ;;  %v1739_v22 = vld [vmem:[#allocation5 + $0x31c] sm:$0xf] }
  0x59   :  { %985 = vmatpush.bf16.msra.mxu1 %v1593_v29  ;;  %1013 = vmatpush.bf16.msra.mxu3 %v1597_v34  ;;  %v1433_v29 = vor.u32 %v1718_v21, %v1432_v19  ;;  %v1710_v32 = vld [vmem:[#allocation5 + $0x22c] sm:$0xf0]  ;;  %v1437_v34 = vor.u32 %v1714_v24, %v1434_v25  ;;  %v1706_v36 = vld [vmem:[#allocation5 + $0x214] sm:$0xf]  ;;  %v1743_v19 = vld [vmem:[#allocation5 + $0x334] sm:$0xf0] }
  0x5a   :  { %v1402_v37 = vld [vmem:[#allocation5 + $0x230] sm:$0xf0]  ;;  %v1401_v45 = vor.u32 %v1710_v32, %v1400_v31  ;;  %v1282_v21 = vld [vmem:[#allocation5 + $0x138] sm:$0xf0]  ;;  %v1537_v25 = vor.u32 %v1743_v19, %v1536_v17  ;;  %v1735_v31 = vld [vmem:[#allocation5 + $0x2f4] sm:$0xf0] }
  0x5b   :  { %972 = vmatpush.bf16.msra.mxu0 %v1305_v40  ;;  %1000 = vmatpush.bf16.msra.mxu2 %v1309_v42  ;;  %v1632_v40 = vld [vmem:[#allocation5 + $0x3d8] sm:$0xf]  ;;  %v1405_v49 = vor.u32 %v1706_v36, %v1402_v37  ;;  %v1538_v23 = vld [vmem:[#allocation5 + $0x338] sm:$0xf0] }
  0x5c   :  { %v1767_v42 = vld [vmem:[#allocation5 + $0x3f4] sm:$0xf0]  ;;  %v1667_v32 = vld [vmem:[#allocation5 + $0xdc] sm:$0xf] }
  0x5d   :  { %986 = vmatpush.bf16.msra.mxu1 %v1561_v41  ;;  %1014 = vmatpush.bf16.msra.mxu3 %v1565_v46  ;;  %v1145_v41 = vor.u32 %v1646_v28, %v1144_v27  ;;  %v1149_v46 = vor.u32 %v1642_v33, %v1146_v35  ;;  %v1633_v51 = vor.u32 %v1767_v42, %v1632_v40  ;;  %v1248_v27 = vld [vmem:[#allocation5 + $0xd8] sm:$0xf]  ;;  %v1250_v33 = vld [vmem:[#allocation5 + $0xf8] sm:$0xf0] }
  0x5e   :  { %v1671_v28 = vld [vmem:[#allocation5 + $0xf4] sm:$0xf0]  ;;  %v1506_v35 = vld [vmem:[#allocation5 + $0x2f8] sm:$0xf0]  ;;  %v1253_v38 = vor.u32 %v1667_v32, %v1250_v33 }
  0x5f   :  { %973 = vmatpush.bf16.msra.mxu0 %v1273_v52  ;;  %1001 = vmatpush.bf16.msra.mxu2 %v1277_v54  ;;  %v1381_v52 = vor.u32 %v1699_v43, %v1378_v44  ;;  %v1695_v54 = vld [vmem:[#allocation5 + $0x1b4] sm:$0xf0]  ;;  %v1249_v36 = vor.u32 %v1671_v28, %v1248_v27  ;;  %v1659_v44 = vld [vmem:[#allocation5 + $0x9c] sm:$0xf] }
  0x60   :  { %v1216_v39 = vld [vmem:[#allocation5 + $0x98] sm:$0xf]  ;;  %v1474_v47 = vld [vmem:[#allocation5 + $0x2b8] sm:$0xf0] }
  0x61   :  { %987 = vmatpush.bf16.msra.mxu1 %v1529_v53  ;;  %1015 = vmatpush.bf16.msra.mxu3 %v1533_v58  ;;  %v1344_v53 = vld [vmem:[#allocation5 + $0x198] sm:$0xf]  ;;  %v1691_v58 = vld [vmem:[#allocation5 + $0x19c] sm:$0xf] }
  0x62   :  { %v1345_v62 = vor.u32 %v1695_v54, %v1344_v53  ;;  %v1663_v40 = vld [vmem:[#allocation5 + $0xb4] sm:$0xf0]  ;;  %v1186_v57 = vld [vmem:[#allocation5 + $0x78] sm:$0xf0] }
  0x63   :  { %974 = vmatpush.bf16.msra.mxu0 %v1241_v0  ;;  %1002 = vmatpush.bf16.msra.mxu2 %v1245_v2  ;;  %v1349_v0 = vor.u32 %v1691_v58, %v1346_v59  ;;  %v1687_v2 = vld [vmem:[#allocation5 + $0x174] sm:$0xf0]  ;;  %v1217_v48 = vor.u32 %v1663_v40, %v1216_v39  ;;  %v1715_v58 = vld [vmem:[#allocation5 + $0x25c] sm:$0xf] }
  0x64   :  { %v1727_v43 = vld [vmem:[#allocation5 + $0x2b4] sm:$0xf0]  ;;  %v1442_v59 = vld [vmem:[#allocation5 + $0x278] sm:$0xf0] }
  0x65   :  { %988 = vmatpush.bf16.msra.mxu1 %v1497_v1  ;;  %1016 = vmatpush.bf16.msra.mxu3 %v1501_v6  ;;  %v1312_v1 = vld [vmem:[#allocation5 + $0x158] sm:$0xf]  ;;  %v1683_v6 = vld [vmem:[#allocation5 + $0x15c] sm:$0xf] }
  0x66   :  { %v1313_v11 = vor.u32 %v1687_v2, %v1312_v1  ;;  %v1440_v53 = vld [vmem:[#allocation5 + $0x258] sm:$0xf]  ;;  %v1445_v2 = vor.u32 %v1715_v58, %v1442_v59  ;;  %v1154_v5 = vld [vmem:[#allocation5 + $0x38] sm:$0xf0] }
  0x67   :  { %975 = vmatpush.bf16.msra.mxu0 %v1209_v13  ;;  %1003 = vmatpush.bf16.msra.mxu2 %v1213_v16  ;;  %v1317_v13 = vor.u32 %v1683_v6, %v1314_v7  ;;  %v1679_v16 = vld [vmem:[#allocation5 + $0x134] sm:$0xf0]  ;;  %v1707_v6 = vld [vmem:[#allocation5 + $0x21c] sm:$0xf] }
  0x68   :  { %v1719_v55 = vld [vmem:[#allocation5 + $0x274] sm:$0xf0]  ;;  %v1410_v7 = vld [vmem:[#allocation5 + $0x238] sm:$0xf0] }
  0x69   :  { %989 = vmatpush.bf16.msra.mxu1 %v1465_v14  ;;  %1017 = vmatpush.bf16.msra.mxu3 %v1469_v20  ;;  %v1280_v14 = vld [vmem:[#allocation5 + $0x118] sm:$0xf]  ;;  %v1675_v20 = vld [vmem:[#allocation5 + $0x11c] sm:$0xf]  ;;  %v1441_v61 = vor.u32 %v1719_v55, %v1440_v53 }
  0x6a   :  { %v1281_v24 = vor.u32 %v1679_v16, %v1280_v14  ;;  %v1408_v1 = vld [vmem:[#allocation5 + $0x218] sm:$0xf] }
  0x6b   :  { %976 = vmatpush.bf16.msra.mxu0 %v1177_v26  ;;  %1004 = vmatpush.bf16.msra.mxu2 %v1181_v30  ;;  %v1285_v26 = vor.u32 %v1675_v20, %v1282_v21  ;;  %v1541_v30 = vor.u32 %v1739_v22, %v1538_v23  ;;  %v1711_v3 = vld [vmem:[#allocation5 + $0x234] sm:$0xf0] }
  0x6c   :  { %v1409_v10 = vor.u32 %v1711_v3, %v1408_v1 }
  0x6d   :  { %990 = vmatpush.bf16.msra.mxu1 %v1433_v29  ;;  %1018 = vmatpush.bf16.msra.mxu3 %v1437_v34  ;;  %v1504_v29 = vld [vmem:[#allocation5 + $0x2d8] sm:$0xf]  ;;  %v1731_v34 = vld [vmem:[#allocation5 + $0x2dc] sm:$0xf] }
  0x6e   :  { %v1505_v37 = vor.u32 %v1735_v31, %v1504_v29  ;;  %v1509_v42 = vor.u32 %v1731_v34, %v1506_v35 }
  0x6f   :  { %977 = vmatpush.bf16.msra.mxu0 %v1145_v41  ;;  %1005 = vmatpush.bf16.msra.mxu2 %v1149_v46  ;;  %v1472_v41 = vld [vmem:[#allocation5 + $0x298] sm:$0xf]  ;;  %v1723_v46 = vld [vmem:[#allocation5 + $0x29c] sm:$0xf] }
  0x70   :  { %v1477_v54 = vor.u32 %v1723_v46, %v1474_v47 }
  0x71   :  { %991 = vmatpush.bf16.msra.mxu1 %v1401_v45  ;;  %1019 = vmatpush.bf16.msra.mxu3 %v1405_v49  ;;  %v1218_v45 = vld [vmem:[#allocation5 + $0xb8] sm:$0xf0]  ;;  %v1473_v49 = vor.u32 %v1727_v43, %v1472_v41 }
  0x72   :  { %1006 = vmatmul.bf16.vlgmr.msra.gmra.mxu2 %v1919_v8  ;;  %978 = vmatmul.bf16.vlgmr.msra.gmra.mxu0 %v1919_v8 }
  0x73   :  { %1026 = vmatpush.bf16.msrb.mxu0 %v1377_v50  ;;  %1054 = vmatpush.bf16.msrb.mxu2 %v1381_v52  ;;  %v1221_v50 = vor.u32 %v1659_v44, %v1218_v45  ;;  %v1655_v52 = vld [vmem:[#allocation5 + $0x74] sm:$0xf0] }
  0x74   :  { %1020 = vmatmul.bf16.vlgmr.msra.gmra.mxu3 %v1921_v15  ;;  %992 = vmatmul.bf16.vlgmr.msra.gmra.mxu1 %v1921_v15 }
  0x75   :  { %1040 = vmatpush.bf16.msrb.mxu1 %v1633_v51  ;;  %1068 = vmatpush.bf16.msrb.mxu3 %v1637_v56  ;;  %v1184_v51 = vld [vmem:[#allocation5 + $0x58] sm:$0xf]  ;;  %v1651_v56 = vld [vmem:[#allocation5 + $0x5c] sm:$0xf] }
  0x76   :  { %v1185_v60 = vor.u32 %v1655_v52, %v1184_v51 }
  0x77   :  { %1027 = vmatpush.bf16.msrb.mxu0 %v1345_v62  ;;  %1055 = vmatpush.bf16.msrb.mxu2 %v1349_v0  ;;  %v1189_v62 = vor.u32 %v1651_v56, %v1186_v57  ;;  %v1647_v0 = vld [vmem:[#allocation5 + $0x34] sm:$0xf0] }
  0x79   :  { %1041 = vmatpush.bf16.msrb.mxu1 %v1601_v63  ;;  %1069 = vmatpush.bf16.msrb.mxu3 %v1605_v4  ;;  %v1152_v63 = vld [vmem:[#allocation5 + $0x18] sm:$0xf]  ;;  %v1643_v4 = vld [vmem:[#allocation5 + $0x1c] sm:$0xf] }
  0x7a   :  { %v1153_v9 = vor.u32 %v1647_v0, %v1152_v63 }
  0x7b   :  { %1028 = vmatpush.bf16.msrb.mxu0 %v1313_v11  ;;  %1056 = vmatpush.bf16.msrb.mxu2 %v1317_v13  ;;  %v1157_v11 = vor.u32 %v1643_v4, %v1154_v5  ;;  %v1939_v13 = vld [vmem:[#allocation7] sm:$0xff] }
  0x7c   :  { %v192_v14 = vperm.slane %v1939_v13, 0  ;;  %v194_v31 = vperm.slane %v1939_v13, 2  ;;  %v195_v35 = vperm.slane %v1939_v13, 3  ;;  %v197_v53 = vperm.slane %v1939_v13, 5 }
  0x7d   :  { %1042 = vmatpush.bf16.msrb.mxu1 %v1569_v12  ;;  %1070 = vmatpush.bf16.msrb.mxu3 %v1573_v18  ;;  %v1413_v12 = vor.u32 %v1707_v6, %v1410_v7  ;;  %v193_v18 = vperm.slane %v1939_v13, 1  ;;  %v198_v3 = vperm.slane %v1939_v13, 6 }
  0x7f   :  { %1029 = vmatpush.bf16.msrb.mxu0 %v1281_v24  ;;  %1057 = vmatpush.bf16.msrb.mxu2 %v1285_v26 }
  0x81   :  { %1043 = vmatpush.bf16.msrb.mxu1 %v1537_v25  ;;  %1071 = vmatpush.bf16.msrb.mxu3 %v1541_v30 }
  0x83   :  { %1030 = vmatpush.bf16.msrb.mxu0 %v1249_v36  ;;  %1058 = vmatpush.bf16.msrb.mxu2 %v1253_v38 }
  0x85   :  { %1044 = vmatpush.bf16.msrb.mxu1 %v1505_v37  ;;  %1072 = vmatpush.bf16.msrb.mxu3 %v1509_v42 }
  0x87   :  { %1031 = vmatpush.bf16.msrb.mxu0 %v1217_v48  ;;  %1059 = vmatpush.bf16.msrb.mxu2 %v1221_v50 }
  0x89   :  { %1045 = vmatpush.bf16.msrb.mxu1 %v1473_v49  ;;  %1073 = vmatpush.bf16.msrb.mxu3 %v1477_v54  ;;  %v196_v49 = vperm.slane %v1939_v13, 4 }
  0x8b   :  { %1032 = vmatpush.bf16.msrb.mxu0 %v1185_v60  ;;  %1060 = vmatpush.bf16.msrb.mxu2 %v1189_v62 }
  0x8d   :  { %1046 = vmatpush.bf16.msrb.mxu1 %v1441_v61  ;;  %1074 = vmatpush.bf16.msrb.mxu3 %v1445_v2 }
  0x8f   :  { %1033 = vmatpush.bf16.msrb.mxu0 %v1153_v9  ;;  %1061 = vmatpush.bf16.msrb.mxu2 %v1157_v11  ;;  %v199_v9 = vperm.slane %v1939_v13, 7 }
  0x91   :  { %1047 = vmatpush.bf16.msrb.mxu1 %v1409_v10  ;;  %1075 = vmatpush.bf16.msrb.mxu3 %v1413_v12 }
  0x92   :  { %1034 = vmatmul.bf16.vlgmr.msrb.gmra.mxu0 %v1919_v8  ;;  %1062 = vmatmul.bf16.vlgmr.msrb.gmra.mxu2 %v1919_v8 }
  0x94   :  { %1048 = vmatmul.bf16.vlgmr.msrb.gmra.mxu1 %v1921_v15  ;;  %1076 = vmatmul.bf16.vlgmr.msrb.gmra.mxu3 %v1921_v15 }
  0xb1   :  { %v867_v16 = vpop.f32.mrf.mxu0 }
  0xb2   :  { %v868_v17 = vadd.f32 %v867_v16, %v192_v14 }
  0xb3   :  { %v881_v19 = vpop.f32.mrf.mxu1 }
  0xb4   :  { %v882_v20 = vadd.f32 %v881_v19, %v868_v17 }
  0xb6   :  { %1082 = vst [vmem:[#allocation8] sm:$0xff] %v882_v20 }
  0xb7   :  { %v895_v21 = vpop.f32.mrf.mxu2 }
  0xb8   :  { %v896_v22 = vadd.f32 %v895_v21, %v193_v18 }
  0xb9   :  { %v909_v23 = vpop.f32.mrf.mxu3  ;;  %v869_v24 = vpop.f32.mrf.mxu0 }
  0xba   :  { %v910_v25 = vadd.f32 %v909_v23, %v896_v22  ;;  %v870_v26 = vadd.f32 %v869_v24, %v192_v14 }
  0xbb   :  { %v883_v8 = vpop.f32.mrf.mxu1 }
  0xbc   :  { %1083 = vst [vmem:[#allocation8 + $0x8] sm:$0xff] %v910_v25  ;;  %v884_v15 = vadd.f32 %v883_v8, %v870_v26 }
  0xbe   :  { %1090 = vst [vmem:[#allocation8 + $0x40] sm:$0xff] %v884_v15 }
  0xbf   :  { %v897_v27 = vpop.f32.mrf.mxu2 }
  0xc0   :  { %v898_v28 = vadd.f32 %v897_v27, %v193_v18 }
  0xc1   :  { %v911_v29 = vpop.f32.mrf.mxu3 }
  0xc2   :  { %v912_v30 = vadd.f32 %v911_v29, %v898_v28 }
  0xc4   :  { %1091 = vst [vmem:[#allocation8 + $0x48] sm:$0xff] %v912_v30 }
  0xcf   :  { %v923_v32 = vpop.f32.mrf.mxu0 }
  0xd0   :  { %v924_v33 = vadd.f32 %v923_v32, %v194_v31 }
  0xd1   :  { %v937_v34 = vpop.f32.mrf.mxu1 }
  0xd2   :  { %v938_v36 = vadd.f32 %v937_v34, %v924_v33 }
  0xd4   :  { %1084 = vst [vmem:[#allocation8 + $0x10] sm:$0xff] %v938_v36 }
  0xd5   :  { %v951_v37 = vpop.f32.mrf.mxu2 }
  0xd6   :  { %v952_v38 = vadd.f32 %v951_v37, %v195_v35 }
  0xd7   :  { %v965_v39 = vpop.f32.mrf.mxu3  ;;  %v925_v41 = vpop.f32.mrf.mxu0 }
  0xd8   :  { %v966_v40 = vadd.f32 %v965_v39, %v952_v38  ;;  %v926_v42 = vadd.f32 %v925_v41, %v194_v31 }
  0xd9   :  { %v939_v43 = vpop.f32.mrf.mxu1 }
  0xda   :  { %1085 = vst [vmem:[#allocation8 + $0x18] sm:$0xff] %v966_v40  ;;  %v940_v44 = vadd.f32 %v939_v43, %v926_v42 }
  0xdc   :  { %1092 = vst [vmem:[#allocation8 + $0x50] sm:$0xff] %v940_v44 }
  0xdd   :  { %v953_v45 = vpop.f32.mrf.mxu2 }
  0xde   :  { %v954_v46 = vadd.f32 %v953_v45, %v195_v35 }
  0xdf   :  { %v967_v47 = vpop.f32.mrf.mxu3 }
  0xe0   :  { %v968_v48 = vadd.f32 %v967_v47, %v954_v46 }
  0xe2   :  { %1093 = vst [vmem:[#allocation8 + $0x58] sm:$0xff] %v968_v48 }
  0xef   :  { %v979_v50 = vpop.f32.mrf.mxu0 }
  0xf0   :  { %v980_v51 = vadd.f32 %v979_v50, %v196_v49 }
  0xf1   :  { %v993_v52 = vpop.f32.mrf.mxu1 }
  0xf2   :  { %v994_v54 = vadd.f32 %v993_v52, %v980_v51 }
  0xf4   :  { %1086 = vst [vmem:[#allocation8 + $0x20] sm:$0xff] %v994_v54 }
  0xf5   :  { %v1007_v55 = vpop.f32.mrf.mxu2 }
  0xf6   :  { %v1008_v56 = vadd.f32 %v1007_v55, %v197_v53 }
  0xf7   :  { %v1021_v57 = vpop.f32.mrf.mxu3  ;;  %v981_v59 = vpop.f32.mrf.mxu0 }
  0xf8   :  { %v1022_v58 = vadd.f32 %v1021_v57, %v1008_v56  ;;  %v982_v60 = vadd.f32 %v981_v59, %v196_v49 }
  0xf9   :  { %v995_v61 = vpop.f32.mrf.mxu1 }
  0xfa   :  { %1087 = vst [vmem:[#allocation8 + $0x28] sm:$0xff] %v1022_v58  ;;  %v996_v62 = vadd.f32 %v995_v61, %v982_v60 }
  0xfc   :  { %1094 = vst [vmem:[#allocation8 + $0x60] sm:$0xff] %v996_v62 }
  0xfd   :  { %v1009_v63 = vpop.f32.mrf.mxu2 }
  0xfe   :  { %v1010_v0 = vadd.f32 %v1009_v63, %v197_v53 }
  0xff   :  { %v1023_v1 = vpop.f32.mrf.mxu3 }
 0x100   :  { %v1024_v2 = vadd.f32 %v1023_v1, %v1010_v0 }
 0x102   :  { %1095 = vst [vmem:[#allocation8 + $0x68] sm:$0xff] %v1024_v2 }
 0x10f   :  { %v1035_v4 = vpop.f32.mrf.mxu0 }
 0x110   :  { %v1036_v5 = vadd.f32 %v1035_v4, %v198_v3 }
 0x111   :  { %v1049_v6 = vpop.f32.mrf.mxu1 }
 0x112   :  { %v1050_v7 = vadd.f32 %v1049_v6, %v1036_v5 }
 0x114   :  { %1088 = vst [vmem:[#allocation8 + $0x30] sm:$0xff] %v1050_v7 }
 0x115   :  { %v1063_v10 = vpop.f32.mrf.mxu2 }
 0x116   :  { %v1064_v11 = vadd.f32 %v1063_v10, %v199_v9 }
 0x117   :  { %v1077_v12 = vpop.f32.mrf.mxu3  ;;  %v1037_v14 = vpop.f32.mrf.mxu0 }
 0x118   :  { %v1038_v16 = vadd.f32 %v1037_v14, %v198_v3  ;;  %v1078_v17 = vadd.f32 %v1077_v12, %v1064_v11 }
 0x119   :  { %v1051_v18 = vpop.f32.mrf.mxu1 }
 0x11a   :  { %v1052_v19 = vadd.f32 %v1051_v18, %v1038_v16  ;;  %1089 = vst [vmem:[#allocation8 + $0x38] sm:$0xff] %v1078_v17 }
 0x11c   :  { %1096 = vst [vmem:[#allocation8 + $0x70] sm:$0xff] %v1052_v19 }
 0x11d   :  { %v1065_v20 = vpop.f32.mrf.mxu2 }
 0x11e   :  { %v1066_v21 = vadd.f32 %v1065_v20, %v199_v9 }
 0x11f   :  { %v1079_v13 = vpop.f32.mrf.mxu3 }
 0x120   :  { %v1080_v22 = vadd.f32 %v1079_v13, %v1066_v21 }
 0x122   :  { %1097 = vst [vmem:[#allocation8 + $0x78] sm:$0xff] %v1080_v22 }
 0x123   :  { %1110 = dma.vmem_to_hbm [thread:$0]  %s1103_s2, 2048, %s1105_s5, [#allocation4], %s1888_s6, %s1888_s6, %s1889_s7  }
 0x124   :  { %1878 = dma.done.wait [#allocation4], 2048  }
 0x125   :  { %1879 = vsyncadd [#allocation4], 4294965248 }
 0x126   :  { %1115 = vsyncpa [#allocation3], 1 }
 0x127   :  { %1116 = vsyncpa [#allocation6], 1 }
 0x128   :  { %1117 = vsyncpa [#allocation4], 1 }

</bundles_post_ra>
